<compile_context>
chip_gen: v6e
topology: v6e:2x2x1
jax: 0.10.0
libtpu: 0.0.40
codegen_flags: <defaults>
</compile_context>

<pallas_src>
import functools

import jax
import jax.numpy as jnp
from jax import lax
from jax.experimental import pallas as pl
from jax.experimental.pallas import tpu as pltpu


def _round_up(v, m):
    return ((v + m - 1) // m) * m


# ---------------------------------------------------------------------------
# Pallas kernel: OUT^T tile = B^T @ A^T tile + bias   (lane axis = M tile)
# ---------------------------------------------------------------------------
def _upconv_matmul_kernel(bT_ref, bias_ref, aT_ref, o_ref):
    acc = jnp.dot(bT_ref[...], aT_ref[...], preferred_element_type=jnp.float32)
    o_ref[...] = (acc + bias_ref[...]).astype(o_ref.dtype)


def _matmul_bias_T(bT, aT, bias, *, tm=512):
    """bT: [N, K] bf16, aT: [K, M] bf16, bias: [N] f32 -> [N, M] f32."""
    N, K = bT.shape
    _, M = aT.shape
    # Lane-dense M tile (multiple of 128); keep padding minimal for small M.
    tm = max(128, min(tm, _round_up(M, 128)))
    tm = _round_up(tm, 128)
    M_pad = _round_up(M, tm)
    if M_pad != M:
        aT = jnp.pad(aT, ((0, 0), (0, M_pad - M)))
    bias2d = bias.astype(jnp.float32).reshape(N, 1)

    out = pl.pallas_call(
        _upconv_matmul_kernel,
        out_shape=jax.ShapeDtypeStruct((N, M_pad), jnp.float32),
        grid_spec=pltpu.PrefetchScalarGridSpec(
            num_scalar_prefetch=0,
            grid=(M_pad // tm,),
            in_specs=[
                pl.BlockSpec((N, K), lambda i: (0, 0)),   # weights, VMEM-resident
                pl.BlockSpec((N, 1), lambda i: (0, 0)),   # bias, VMEM-resident
                pl.BlockSpec((K, tm), lambda i: (0, i)),  # A^T tile (lane-dense)
            ],
            out_specs=pl.BlockSpec((N, tm), lambda i: (0, i)),
        ),
        compiler_params=pltpu.CompilerParams(
            # K = 4*cin is tiny here, so full-K per tile; add a K grid axis
            # ("arbitrary", VMEM f32 accumulator) only if cin grows large.
            dimension_semantics=("parallel",),
        ),
    )(bT, bias2d, aT)
    return out[:, :M]


# ---------------------------------------------------------------------------
# ConvTranspose2d (stride=s, kernel=2s, padding=s//2) via sub-pixel matmul
# ---------------------------------------------------------------------------
def _conv_transpose2d_impl(x, w, bias, scale, tm):
    """x: [n, cin, h, w] NCHW; w: [cin, cout, 2s, 2s] (PyTorch ConvTranspose2d
    layout); bias: [cout].  Returns [n, cout, h*s, w*s] float32."""
    n, cin, h, wd = x.shape
    cout = w.shape[1]
    s = int(scale)
    p = s // 2
    k = 2 * s
    assert w.shape[2] == k and w.shape[3] == k

    # Sub-pixel identity (with Y=(yo+p)//s, ry=(yo+p)%s, same for X/rx):
    #   out[b,co,yo,xo] = bias[co]
    #     + sum_{ci,wy,wx} xpad[b,ci,Y+wy,X+wx] * w[ci,co,(1-wy)*s+ry,(1-wx)*s+rx]
    # where xpad is x zero-padded by 1 on each spatial side.

    xb = x.astype(jnp.bfloat16)
    xpad = jnp.pad(xb, ((0, 0), (0, 0), (1, 1), (1, 1)))    # (n, cin, h+2, w+2)

    ho_g, wo_g = h + 1, wd + 1                               # sub-pixel grid extent
    M = n * ho_g * wo_g
    K = 4 * cin
    N = s * s * cout

    # A^T: (K, M); K-order = ((wy, wx), ci), M-order = (b, Y, X).
    shifts = [xpad[:, :, wy:wy + ho_g, wx:wx + wo_g]
              for wy in (0, 1) for wx in (0, 1)]             # each (n, cin, ho_g, wo_g)
    aT = jnp.stack(shifts, axis=0)                           # (4, n, cin, ho_g, wo_g)
    aT = aT.transpose(0, 2, 1, 3, 4).reshape(K, M)           # ((wy,wx),ci ; b,Y,X)

    # B^T: (N, K); N-order = (ry, rx, co), matching A^T's K-order.
    w6 = w.astype(jnp.bfloat16).reshape(cin, cout, 2, s, 2, s)  # (ci,co,dy,ry,dx,rx)
    w6 = w6[:, :, ::-1, :, ::-1, :]                             # dy -> wy, dx -> wx
    bT = w6.transpose(3, 5, 1, 2, 4, 0).reshape(N, K)           # (ry,rx,co ; wy,wx,ci)

    bias_n = jnp.tile(bias.astype(jnp.float32), s * s)          # (N,), order (ry,rx,co)

    # Hot path: Pallas matmul + fused bias, lane-dense output tiles.
    zT = _matmul_bias_T(bT, aT, bias_n, tm=tm)                  # (N, M) f32

    # Pixel shuffle + crop for the s//2 half-pixel offset (single XLA relayout).
    z = zT.reshape(s, s, cout, n, ho_g, wo_g)                   # (ry,rx,co,b,Y,X)
    z = z.transpose(3, 2, 4, 0, 5, 1)                           # (b,co,Y,ry,X,rx)
    z = z.reshape(n, cout, ho_g * s, wo_g * s)
    return z[:, :, p:p + h * s, p:p + wd * s]


@functools.partial(jax.jit, static_argnums=(3, 4))
def _conv_transpose2d_jit(x, w, bias, scale, tm):
    return _conv_transpose2d_impl(x, w, bias, scale, tm)


def conv_transpose2d_pallas(x, w, bias, scale, tm=512):
    return _conv_transpose2d_jit(x, w, bias, int(scale), int(tm))


# ---------------------------------------------------------------------------
# RefineUpConv2d equivalent
# ---------------------------------------------------------------------------
def init_refine_up_conv2d(key, in_ch, out_ch, level):
    scale = 1 << level
    if scale == 1:
        return {"scale": 1}
    k = 2 * scale
    kw, kb = jax.random.split(key)
    # PyTorch ConvTranspose2d weight shape: (in_ch, out_ch, kH, kW)
    w = jax.random.normal(kw, (in_ch, out_ch, k, k), jnp.float32) * 0.1
    b = jax.random.normal(kb, (out_ch,), jnp.float32) * 0.1
    return {"scale": scale, "k": k, "p": scale // 2, "w": w, "b": b}


def refine_up_conv2d_forward(params, xs):
    """Mimics the PyTorch forward: pop last, upsample, insert at front."""
    x = xs.pop()
    if params["scale"] == 1:
        y = x
    else:
        y = conv_transpose2d_pallas(x, params["w"], params["b"], params["scale"])
    xs.insert(0, y)
    return xs


# ---------------------------------------------------------------------------
# Reference (pure JAX/XLA) for validation
# ---------------------------------------------------------------------------
def _conv_transpose2d_ref(x, w, bias, scale, k, p):
    w_oihw = jnp.transpose(w[:, :, ::-1, ::-1], (1, 0, 2, 3))  # (cout, cin, k, k)
    pad = k - 1 - p
    y = lax.conv_general_dilated(
        x, w_oihw,
        window_strides=(1, 1),
        padding=[(pad, pad), (pad, pad)],
        lhs_dilation=(scale, scale),
        dimension_numbers=("NCHW", "OIHW", "NCHW"),
    )
    return y + bias.reshape(1, -1, 1, 1)


if __name__ == "__main__":
    key = jax.random.PRNGKey(0)
    k_param, k_x1, k_x2 = jax.random.split(key, 3)

    in_ch, out_ch, level = 4, 8, 1          # scale=2, kernel=4, stride=2, pad=1
    params = init_refine_up_conv2d(k_param, in_ch, out_ch, level)

    # xs is a list; only the last element is transformed.
    x_last = jax.random.normal(k_x1, (2, in_ch, 16, 16), jnp.float32)
    x_other = jax.random.normal(k_x2, (2, out_ch, 32, 32), jnp.float32)
    xs = [x_other, x_last]

    xs_out = refine_up_conv2d_forward(params, list(xs))
    y = jax.block_until_ready(xs_out[0])
    assert y.shape == (2, out_ch, 32, 32), y.shape
    assert xs_out[1].shape == x_other.shape

    y_ref = _conv_transpose2d_ref(
        x_last, params["w"], params["b"], params["scale"], params["k"], params["p"]
    )
    # bf16 operands with f32 accumulation -> loosen tolerance vs f32 reference.
    max_err = float(jnp.max(jnp.abs(y - y_ref)))
    assert max_err < 1e-1, max_err

    print("KERNEL_OK")
</pallas_src>

<mosaic_0001>
module attributes {stable_mosaic.version = 11 : i64} {
  func.func @_upconv_matmul_kernel(%arg0: i32, %arg1: memref<32x16xbf16, #tpu.memory_space<vmem>>, %arg2: memref<32x1xf32, #tpu.memory_space<vmem>>, %arg3: memref<16x512xbf16, #tpu.memory_space<vmem>>, %arg4: memref<32x512xf32, #tpu.memory_space<vmem>>) attributes {dimension_semantics = [#tpu.dimension_semantics<parallel>], iteration_bounds = array<i64: 2>, scalar_prefetch = 0 : i64, scratch_operands = 0 : i64, tpu.core_type = #tpu.core_type<tc>, window_params = [{pipeline_mode = #tpu.pipeline_mode<synchronous>, transform_indices = @transform_0, window_bounds = array<i64: 32, 16>}, {pipeline_mode = #tpu.pipeline_mode<synchronous>, transform_indices = @transform_1, window_bounds = array<i64: 32, 1>}, {transform_indices = @transform_2, window_bounds = array<i64: 16, 512>}, {transform_indices = @transform_3, window_bounds = array<i64: 32, 512>}]} {
    %c0 = arith.constant 0 : index
    %c0_0 = arith.constant 0 : index
    %0 = vector.load %arg1[%c0, %c0_0] : memref<32x16xbf16, #tpu.memory_space<vmem>>, vector<32x16xbf16>
    %c0_1 = arith.constant 0 : index
    %c0_2 = arith.constant 0 : index
    %1 = vector.load %arg3[%c0_1, %c0_2] : memref<16x512xbf16, #tpu.memory_space<vmem>>, vector<16x512xbf16>
    %cst = arith.constant dense<0.000000e+00> : vector<32x512xf32>
    %2 = tpu.matmul %0, %1, %cst {dimension_numbers = #tpu.dot_dimension_numbers<[1], [0], [0], [1], [0, 0, 1, 1], [], []>} : vector<32x16xbf16>, vector<16x512xbf16>, vector<32x512xf32> -> vector<32x512xf32>
    %c0_3 = arith.constant 0 : index
    %c0_4 = arith.constant 0 : index
    %3 = vector.load %arg2[%c0_3, %c0_4] : memref<32x1xf32, #tpu.memory_space<vmem>>, vector<32x1xf32>
    %4 = vector.broadcast %3 : vector<32x1xf32> to vector<32x512xf32>
    %5 = arith.addf %2, %4 : vector<32x512xf32>
    %c0_5 = arith.constant 0 : index
    %c0_6 = arith.constant 0 : index
    %6 = vector.load %arg4[%c0_5, %c0_6] : memref<32x512xf32, #tpu.memory_space<vmem>>, vector<32x512xf32>
    tpu.vector_store %arg4[%c0_5, %c0_6], %5 {strides = array<i32>} : memref<32x512xf32, #tpu.memory_space<vmem>>, vector<32x512xf32>,
    return
  }
  func.func @transform_0(%arg0: i32) -> (i32, i32) {
    %c0_i32 = arith.constant 0 : i32
    %c0_i32_0 = arith.constant 0 : i32
    %c0_i32_1 = arith.constant 0 : i32
    return %c0_i32, %c0_i32_0 : i32, i32
  }
  func.func @transform_1(%arg0: i32) -> (i32, i32) {
    %c0_i32 = arith.constant 0 : i32
    %c0_i32_0 = arith.constant 0 : i32
    %c0_i32_1 = arith.constant 0 : i32
    return %c0_i32, %c0_i32_0 : i32, i32
  }
  func.func @transform_2(%arg0: i32) -> (i32, i32) {
    %c0_i32 = arith.constant 0 : i32
    %c0_i32_0 = arith.constant 0 : i32
    return %c0_i32, %arg0 : i32, i32
  }
  func.func @transform_3(%arg0: i32) -> (i32, i32) {
    %c0_i32 = arith.constant 0 : i32
    %c0_i32_0 = arith.constant 0 : i32
    return %c0_i32, %arg0 : i32, i32
  }
}

</mosaic_0001>

<bundles_post_ra>
// kernel: tile.8
= control target key start
LH: loop header
LB: loop body
LE: loop exit
PB: predicated region body
PF: predicated region fallthrough
CT: control target
= control target key end

     0   :  { %2 = vsyncpa [#allocation1], 0  ;;  %s42_s6 = smov [#allocation0]   ;;  %s59_s0 = inlined_call_operand.hbm [shape: f32[8], index: 0, kind: input, shape index: {}]   ;;  %s60_s1 = inlined_call_operand.vmem [shape: f32[4,8], index: 1, kind: output, shape index: {}]  }
   0x1   :  { %s9_s7 = sshll.u32 %s42_s6, 4  ;;  %s10_s7 = int_to_ptr.vmem [resolvable:$true] %s9_s7 }
   0x2   :  { %s28_s8 = scalar_lea.vmem %s10_s7, 16  ;;  %s32_s9 = scalar_lea.vmem %s10_s7, 32 }
   0x3   :  { %p29_p0 = scmp.ne.s32.totalorder %s10_s7, %s28_s8  ;;  %p33_p1 = scmp.lt.s32.totalorder %s10_s7, %s10_s7 }
   0x4   :  { %p34_p2 = scmp.lt.s32.totalorder %s32_s9, %s28_s8 }
   0x6   :  { %p35_p3 = por %p34_p2, %p33_p1 }
   0x8   :  { %p36_p4 = pnand %p35_p3, %p29_p0 }
   0xa   :  { %39 = shalt.err (!%p36_p4)
}
   0xb   :  { %12 = dma.hbm_to_vmem [thread:$0]  %s59_s0, 16, %s10_s7, [#allocation1]  }
   0xc   :  { %40 = dma.done.wait [#allocation1], 16  }
   0xd   :  { %41 = vsyncadd [#allocation1], 4294967280  ;;  %v16_v0 = vld [vmem:[#allocation0] ss:$0 sm:$0xff] }
   0xe   :  { %17 = vst [vmem:[%s60_s1] sm:$0xf] %v16_v0 }
   0xf   :  { %18 = vsyncpa [#allocation1], 1 }

// kernel: tile.0
= control target key start
LH: loop header
LB: loop body
LE: loop exit
PB: predicated region body
PF: predicated region fallthrough
CT: control target
= control target key end

     0   :  { %s67_s8 = smov 125   ;;  %vm8_vm0 = vcmask 7168   ;;  %s68_s11 = smov 126   ;;  %s118_s0 = inlined_call_operand.vmem [shape: f32[4,8], index: 0, kind: input, shape index: {}]   ;;  %s119_s1 = inlined_call_operand.vmem [shape: f32[32,1], index: 1, kind: output, shape index: {}]  }
   0x1   :  { %v5_v0 = vld [vmem:[%s118_s0] sm:$0xf]  ;;  %s66_s0 = smov 127   ;;  %s69_s12 = smov 124  }
   0x2   :  { %6 = vst [vmem:[#allocation0] sm:$0xf] %v5_v0  ;;  %s70_s13 = smov 123   ;;  %s71_s14 = smov 122  }
   0x3   :  { %s72_s15 = smov 121  }
   0x9   :  { %v10_v1 = vld [vmem:[#allocation0] sm:$0xf]  }
   0xa   :  { %v22_v2 = vld [vmem:[#allocation0] sm:$0xf]   ;;  %11 = vrot.lane.b32.xlu0 %v10_v1, %s66_s0 }
   0xb   :  { %23 = vrot.lane.b32.xlu1 %v22_v2, %s67_s8  ;;  %v16_v3 = vld [vmem:[#allocation0] sm:$0xf]  }
   0xc   :  { %v28_v4 = vld [vmem:[#allocation0] sm:$0xf]  }
   0xd   :  { %v7_v5 = vld [vmem:[#allocation0] sm:$0xf]  }
   0xe   :  { %9 = vst.msk [vmem:[%s119_s1] ss:$8 sm:$0xf] %vm8_vm0, %v7_v5   ;;  %17 = vrot.lane.b32.xlu0 %v16_v3, %s68_s11  ;;  %v34_v6 = vld [vmem:[#allocation0] sm:$0xf]  }
   0xf   :  { %29 = vrot.lane.b32.xlu1 %v28_v4, %s69_s12  ;;  %v40_v7 = vld [vmem:[#allocation0] sm:$0xf]  }
  0x10   :  { %v46_v8 = vld [vmem:[#allocation0] sm:$0xf]  }
  0x12   :  { %35 = vrot.lane.b32.xlu0 %v34_v6, %s70_s13 }
  0x13   :  { %41 = vrot.lane.b32.xlu1 %v40_v7, %s71_s14 }
  0x16   :  { %47 = vrot.lane.b32.xlu0 %v46_v8, %s72_s15 }
  0x7c   :  { %v12_v9 = vpop.permute.xlu0 %11  }
  0x7d   :  { %v24_v10 = vpop.permute.xlu1 %23   ;;  %52 = vst.msk [vmem:[%s119_s1 + $0x1] ss:$8 sm:$0xf] %vm8_vm0, %v12_v9  }
  0x7e   :  { %54 = vst.msk [vmem:[%s119_s1 + $0x3] ss:$8 sm:$0xf] %vm8_vm0, %v24_v10  }
  0x80   :  { %v18_v11 = vpop.permute.xlu0 %17  }
  0x81   :  { %v30_v12 = vpop.permute.xlu1 %29   ;;  %53 = vst.msk [vmem:[%s119_s1 + $0x2] ss:$8 sm:$0xf] %vm8_vm0, %v18_v11  }
  0x82   :  { %55 = vst.msk [vmem:[%s119_s1 + $0x4] ss:$8 sm:$0xf] %vm8_vm0, %v30_v12  }
  0x84   :  { %v36_v13 = vpop.permute.xlu0 %35  }
  0x85   :  { %v42_v14 = vpop.permute.xlu1 %41   ;;  %56 = vst.msk [vmem:[%s119_s1 + $0x5] ss:$8 sm:$0xf] %vm8_vm0, %v36_v13  }
  0x86   :  { %57 = vst.msk [vmem:[%s119_s1 + $0x6] ss:$8 sm:$0xf] %vm8_vm0, %v42_v14  }
  0x88   :  { %v48_v15 = vpop.permute.xlu0 %47  }
  0x89   :  { %58 = vst.msk [vmem:[%s119_s1 + $0x7] ss:$8 sm:$0xf] %vm8_vm0, %v48_v15  }

// kernel: _conv_transpose2d_jit.1
= control target key start
LH: loop header
LB: loop body
LE: loop exit
PB: predicated region body
PF: predicated region fallthrough
CT: control target
= control target key end

     0   :  { %s605_s12 = smov 0   ;;  %s607_s13 = smov 0   ;;  %s721_s0 = inlined_call_operand.vmem [shape: bf16[32,16], index: 0, kind: input, shape index: {}]   ;;  %s722_s1 = inlined_call_operand.vmem [shape: f32[32,1], index: 1, kind: input, shape index: {}]   ;;  %s723_s2 = inlined_call_operand.vmem [shape: bf16[16,1024], index: 2, kind: input, shape index: {}]   ;;  %s724_s3 = inlined_call_operand.vmem [shape: f32[32,1024], index: 3, kind: output, shape index: {}]  }
   0x1   :  { %s609_s14 = smov 0  }
   0x2 LB: > { %s498_s15 = sadd.s32 4294967295, %s582_s14   ;;  %s622_s16 = sadd.s32 1, %s582_s14   ;;  %s582_s14 = sphi %s609_s14, %s728_s14   ;;  %s578_s13 = sphi %s607_s13, %s727_s13   ;;  %s574_s12 = sphi %s605_s12, %s726_s12  }
   0x3   : > { %s59_s17 = ssub.s32 %s582_s14, %s622_s16  ;;  %s62_s18 = sadd.s32 1, %s578_s13 }
   0x4   : > { %p60_p0 = scmp.eq.s32.totalorder %s59_s17, 0  ;;  %p69_p1 = scmp.ne.s32.totalorder %s578_s13, %s574_s12 }
   0x5   : > { %p70_p2 = scmp.eq.s32.totalorder %s582_s14, 0  ;;  %p99_p3 = scmp.eq.s32.totalorder %s498_s15, 1 }
   0x6   : > { %s633_s19 = scalar_select %p60_p0, %s578_s13, %s62_s18  }
   0x7   : > { %p71_p4 = por %p70_p2, %p69_p1  ;;  %p635_p5 = por %p99_p3, %p69_p1 }
   0x8   : > { %p501_p6 = scmp.ge.s32.totalorder %s582_s14, 2 }
   0xa   : > { %127 = sbr.rel (%p501_p6) target bundleno = 21 (0x15), region = 24 }
   0xf   : > { %130 = sbr.rel (!%p71_p4) target bundleno = 21 (0x15), region = 28  ;;  %s132_s21 = sand.u32 (%p71_p4), 1, %s578_s13  }
  0x10   : > { %s523_s22 = sshll.u32 (%p71_p4), %s582_s14, 4  ;;  %s502_s23 = sshll.u32 (%p71_p4), %s132_s21, 5 }
  0x11   : > { %s137_s26 = scalar_lea.vmem (%p71_p4), %s723_s2, %s523_s22  ;;  %s134_s27 = scalar_lea.vmem (%p71_p4), [#allocation2], %s502_s23 }
  0x12   : > { %v150_v0 = vld [vmem:[%s137_s26] sm:$0xff] (%p71_p4)  ;;  %v152_v1 = vld [vmem:[%s137_s26 + $0x8] sm:$0xff] (%p71_p4) }
  0x13   : > { %v154_v2 = vld [vmem:[%s137_s26 + $0x20] sm:$0xff] (%p71_p4)  ;;  %151 = vst [vmem:[%s134_s27] sm:$0xff] (%p71_p4), %v150_v0  ;;  %153 = vst [vmem:[%s134_s27 + $0x8] sm:$0xff] (%p71_p4), %v152_v1  ;;  %v156_v3 = vld [vmem:[%s137_s26 + $0x28] sm:$0xff] (%p71_p4) }
  0x14   : > { %155 = vst [vmem:[%s134_s27 + $0x10] sm:$0xff] %v154_v2  ;;  %157 = vst [vmem:[%s134_s27 + $0x18] sm:$0xff] %v156_v3 }
  0x15 PF: > { %p505_p7 = scmp.ge.s32.totalorder %s582_s14, 1  ;;  %p162_p8 = scmp.lt.s32.totalorder %s582_s14, 3 }
  0x17   : > { %p163_p9 = pnand %p505_p7, %p162_p8 }
  0x18   : > { %s169_s28 = sand.u32 (!%p163_p9), 1, %s574_s12  }
  0x19   : > { %166 = sbr.rel (%p163_p9) target bundleno = 256 (0x100), region = 51  ;;  %s506_s29 = sshll.u32 (!%p163_p9), %s169_s28, 5 }
  0x1a   : > { %s171_s5 = scalar_lea.vmem (!%p163_p9), [#allocation2], %s506_s29  ;;  %s507_s23 = sshll.u32 (!%p163_p9), %s169_s28, 7 }
  0x1b   : > { %s670_s24 = scalar_lea.vmem (!%p163_p9), [#allocation3], %s507_s23 }
  0x1e   : > { %v584_v4 = vmov 0   ;;  %v202_v5 = vld [vmem:[%s722_s1] sm:$0xff]  ;;  %v554_v7 = vld [vmem:[%s171_s5 + $0xc] ss:$16 sps:$4 sm:$0xff]   ;;  %v557_v9 = vld [vmem:[%s171_s5 + $0x8] ss:$16 sps:$4 sm:$0xff]  }
  0x1f   : > { %295 = vmatprep.mubr.bf16.mxu0 %v584_v4  ;;  %348 = vmatprep.mubr.bf16.mxu1 %v584_v4  ;;  %v552_v6 = vld [vmem:[%s171_s5 + $0x4] ss:$16 sps:$4 sm:$0xff]   ;;  %v556_v8 = vld [vmem:[%s171_s5] ss:$16 sps:$4 sm:$0xff]   ;;  %v203_v10 = vld [vmem:[%s722_s1 + $0x8] sm:$0xff]  ;;  %vm256_vm0 = vcmask 130048  }
  0x20   : > { %550 = vset.pattern.permute.xlu0 %v584_v4  ;;  %551 = vset.pattern.permute.xlu1 %v584_v4  ;;  %v558_v11 = vld [vmem:[%s721_s0] sm:$0xff]   ;;  %v204_v12 = vld [vmem:[%s722_s1 + $0x10] sm:$0xff]  ;;  %v205_v13 = vld [vmem:[%s722_s1 + $0x18] sm:$0xff]  ;;  %s524_s12 = sshll.u32 (%p635_p5), %s498_s15, 5 }
  0x21   : > { %208 = vperm.xlu0 %550, %v202_v5   ;;  %277 = vmatprep.subr.bf16.mxu0 %v552_v6  ;;  %v559_v14 = vld [vmem:[%s721_s0 + $0x8] sm:$0xff]   ;;  %s394_s20 = scalar_lea.vmem (%p635_p5), %s724_s3, %s524_s12 }
  0x22   : > { %330 = vmatprep.subr.bf16.mxu1 %v554_v7  ;;  %278 = vmatpush1.bf16.msra.mxu0 %v556_v8 }
  0x23   : > { %331 = vmatpush1.bf16.msra.mxu1 %v557_v9  ;;  %218 = vperm.xlu1 %551, %v204_v12  }
  0x25   : > { %213 = vperm.xlu0 %550, %v203_v10   ;;  %514 = vmatmul.mubr.msk.bf16.vlgmr.msra.gmra.mxu0 %vm256_vm0, %v558_v11 }
  0x26   : > { %516 = vmatmul.mubr.msk.bf16.vlgmr.msra.gmra.mxu1 %vm256_vm0, %v558_v11  ;;  %305 = vmatprep.mubr.bf16.mxu0 %v584_v4 }
  0x27   : > { %358 = vmatprep.mubr.bf16.mxu1 %v584_v4  ;;  %223 = vperm.xlu1 %551, %v205_v13  }
  0x2d   : > { %515 = vmatmul.mubr.msk.bf16.gmra.mxu0 %vm256_vm0, %v559_v14 }
  0x2e   : > { %517 = vmatmul.mubr.msk.bf16.gmra.mxu1 %vm256_vm0, %v559_v14 }
  0x9c   : > { %v209_v15 = vpop.permute.xlu0 %208 }
  0x9e   : > { %v219_v29 = vpop.permute.xlu1 %218 }
  0xa0   : > { %v214_v20 = vpop.permute.xlu0 %213 }
  0xa2   : > { %v224_v40 = vpop.permute.xlu1 %223 }
  0xe5   : > { %v297_v16 = vpop.f32.mrf.mxu0 }
  0xe6   : > { %v350_v17 = vpop.f32.mrf.mxu1  ;;  %v298_v18 = vadd.f32 %v297_v16, %v209_v15 }
  0xe7   : > { %v351_v19 = vadd.f32 %v350_v17, %v209_v15  ;;  %v299_v21 = vpop.f32.mrf.mxu0 }
  0xe8   : > { %v352_v22 = vpop.f32.mrf.mxu1  ;;  %369 = vst [vmem:[%s670_s24] sm:$0xff] %v298_v18  ;;  %v300_v23 = vadd.f32 %v299_v21, %v209_v15 }
  0xe9   : > { %371 = vst [vmem:[%s670_s24 + $0x10] sm:$0xff] %v351_v19  ;;  %v353_v24 = vadd.f32 %v352_v22, %v209_v15  ;;  %v301_v25 = vpop.f32.mrf.mxu0 }
  0xea   : > { %v354_v26 = vpop.f32.mrf.mxu1  ;;  %370 = vst [vmem:[%s670_s24 + $0x8] sm:$0xff] %v300_v23  ;;  %v302_v27 = vadd.f32 %v301_v25, %v214_v20 }
  0xeb   : > { %372 = vst [vmem:[%s670_s24 + $0x18] sm:$0xff] %v353_v24  ;;  %v355_v28 = vadd.f32 %v354_v26, %v214_v20  ;;  %v303_v30 = vpop.f32.mrf.mxu0 }
  0xec   : > { %v356_v31 = vpop.f32.mrf.mxu1  ;;  %373 = vst [vmem:[%s670_s24 + $0x20] sm:$0xff] %v302_v27  ;;  %v304_v32 = vadd.f32 %v303_v30, %v214_v20 }
  0xed   : > { %375 = vst [vmem:[%s670_s24 + $0x30] sm:$0xff] %v355_v28  ;;  %v357_v33 = vadd.f32 %v356_v31, %v214_v20  ;;  %v307_v34 = vpop.f32.mrf.mxu0 }
  0xee   : > { %v360_v35 = vpop.f32.mrf.mxu1  ;;  %374 = vst [vmem:[%s670_s24 + $0x28] sm:$0xff] %v304_v32  ;;  %v308_v36 = vadd.f32 %v307_v34, %v219_v29 }
  0xef   : > { %376 = vst [vmem:[%s670_s24 + $0x38] sm:$0xff] %v357_v33  ;;  %v361_v37 = vadd.f32 %v360_v35, %v219_v29  ;;  %v309_v38 = vpop.f32.mrf.mxu0  ;;  %v407_v51 = vld [vmem:[%s670_s24] sm:$0xff] (%p635_p5) }
  0xf0   : > { %v362_v39 = vpop.f32.mrf.mxu1  ;;  %377 = vst [vmem:[%s670_s24 + $0x40] sm:$0xff] %v308_v36  ;;  %v310_v41 = vadd.f32 %v309_v38, %v219_v29  ;;  %v411_v53 = vld [vmem:[%s670_s24 + $0x10] sm:$0xff] (%p635_p5)  ;;  %408 = vst [vmem:[%s394_s20] sm:$0xff] (%p635_p5), %v407_v51 }
  0xf1   : > { %379 = vst [vmem:[%s670_s24 + $0x50] sm:$0xff] %v361_v37  ;;  %v363_v42 = vadd.f32 %v362_v39, %v219_v29  ;;  %v311_v43 = vpop.f32.mrf.mxu0  ;;  %v409_v52 = vld [vmem:[%s670_s24 + $0x8] sm:$0xff] (%p635_p5)  ;;  %412 = vst [vmem:[%s394_s20 + $0x10] sm:$0xff] (%p635_p5), %v411_v53 }
  0xf2   : > { %v364_v44 = vpop.f32.mrf.mxu1  ;;  %378 = vst [vmem:[%s670_s24 + $0x48] sm:$0xff] %v310_v41  ;;  %v312_v45 = vadd.f32 %v311_v43, %v224_v40  ;;  %v413_v54 = vld [vmem:[%s670_s24 + $0x18] sm:$0xff] (%p635_p5)  ;;  %410 = vst [vmem:[%s394_s20 + $0x8] sm:$0xff] (%p635_p5), %v409_v52 }
  0xf3   : > { %380 = vst [vmem:[%s670_s24 + $0x58] sm:$0xff] %v363_v42  ;;  %v365_v46 = vadd.f32 %v364_v44, %v224_v40  ;;  %v313_v47 = vpop.f32.mrf.mxu0  ;;  %391 = sbr.rel (!%p635_p5) target bundleno = 256 (0x100), region = 59  ;;  %v415_v55 = vld [vmem:[%s670_s24 + $0x20] sm:$0xff] (%p635_p5)  ;;  %414 = vst [vmem:[%s394_s20 + $0x18] sm:$0xff] (%p635_p5), %v413_v54 }
  0xf4   : > { %v366_v48 = vpop.f32.mrf.mxu1  ;;  %381 = vst [vmem:[%s670_s24 + $0x60] sm:$0xff] %v312_v45  ;;  %v314_v49 = vadd.f32 %v313_v47, %v224_v40  ;;  %416 = vst [vmem:[%s394_s20 + $0x40] sm:$0xff] (%p635_p5), %v415_v55  ;;  %v419_v57 = vld [vmem:[%s670_s24 + $0x30] sm:$0xff] (%p635_p5) }
  0xf5   : > { %383 = vst [vmem:[%s670_s24 + $0x70] sm:$0xff] %v365_v46  ;;  %v367_v50 = vadd.f32 %v366_v48, %v224_v40  ;;  %v417_v56 = vld [vmem:[%s670_s24 + $0x28] sm:$0xff] (%p635_p5)  ;;  %420 = vst [vmem:[%s394_s20 + $0x50] sm:$0xff] (%p635_p5), %v419_v57 }
  0xf6   : > { %382 = vst [vmem:[%s670_s24 + $0x68] sm:$0xff] %v314_v49  ;;  %418 = vst [vmem:[%s394_s20 + $0x48] sm:$0xff] (%p635_p5), %v417_v56  ;;  %v421_v58 = vld [vmem:[%s670_s24 + $0x38] sm:$0xff] (%p635_p5) }
  0xf7   : > { %384 = vst [vmem:[%s670_s24 + $0x78] sm:$0xff] %v367_v50  ;;  %v423_v59 = vld [vmem:[%s670_s24 + $0x40] sm:$0xff] (%p635_p5)  ;;  %422 = vst [vmem:[%s394_s20 + $0x58] sm:$0xff] (%p635_p5), %v421_v58 }
  0xf8   : > { %424 = vst [vmem:[%s394_s20 + $0x80] sm:$0xff] %v423_v59  ;;  %v427_v61 = vld [vmem:[%s670_s24 + $0x50] sm:$0xff] }
  0xf9   : > { %v425_v60 = vld [vmem:[%s670_s24 + $0x48] sm:$0xff]  ;;  %428 = vst [vmem:[%s394_s20 + $0x90] sm:$0xff] %v427_v61 }
  0xfa   : > { %v429_v62 = vld [vmem:[%s670_s24 + $0x58] sm:$0xff]  ;;  %426 = vst [vmem:[%s394_s20 + $0x88] sm:$0xff] %v425_v60 }
  0xfb   : > { %430 = vst [vmem:[%s394_s20 + $0x98] sm:$0xff] %v429_v62  ;;  %v431_v63 = vld [vmem:[%s670_s24 + $0x60] sm:$0xff] }
  0xfc   : > { %v435_v1 = vld [vmem:[%s670_s24 + $0x70] sm:$0xff]  ;;  %432 = vst [vmem:[%s394_s20 + $0xc0] sm:$0xff] %v431_v63 }
  0xfd   : > { %v433_v0 = vld [vmem:[%s670_s24 + $0x68] sm:$0xff]  ;;  %436 = vst [vmem:[%s394_s20 + $0xd0] sm:$0xff] %v435_v1 }
  0xfe   : > { %434 = vst [vmem:[%s394_s20 + $0xc8] sm:$0xff] %v433_v0  ;;  %v437_v2 = vld [vmem:[%s670_s24 + $0x78] sm:$0xff] }
  0xff   : > { %438 = vst [vmem:[%s394_s20 + $0xd8] sm:$0xff] %v437_v2 }
 0x100 PF: > { %p10_p10 = scmp.ge.s32.totalorder %s622_s16, 4   ;;  %s726_s12 = smov %s578_s13 }
 0x101   : > { %s727_s13 = smov %s633_s19  ;;  %s728_s14 = smov %s622_s16 }
 0x102   :  { %12 = sbr.rel (!%p10_p10) target bundleno = 2 (0x2), region = 113 }

</bundles_post_ra>
